<compile_context>
chip_gen: v7x
topology: tpu7x:2x2x1
jax: 0.10.0
libtpu: 0.0.40
codegen_flags: <defaults>
</compile_context>

<pallas_src>
import math
import numpy as np
import jax
import jax.numpy as jnp
from jax.experimental import pallas as pl
from jax.experimental.pallas import tpu as pltpu  # noqa: F401  (TPU backend)

_HI = jax.lax.Precision.HIGHEST


def _dct2_ortho_matrix(n: int) -> np.ndarray:
    """DCT-II orthonormal matrix D with D[k, i] = c_k * cos(pi*(2i+1)*k/(2n))."""
    k = np.arange(n).reshape(-1, 1)
    i = np.arange(n).reshape(1, -1)
    mat = np.cos(np.pi * (2 * i + 1) * k / (2.0 * n))
    scale = np.full((n, 1), math.sqrt(2.0 / n))
    scale[0, 0] = math.sqrt(1.0 / n)
    return (mat * scale).astype(np.float32)


def precompute_fused_affine(low_pass_filter, dct_matrix, w, b, seq_len, pred_len):
    """One-time, host-side (numpy, float64) folding of the whole model into a
    single affine map along the seq axis:

        out_row(1,P) = x_row(1,L) @ M_total(L,P) + b

    where M_total = (I - J/L) @ Dmat @ DCT.T / in_len @ W.T  +  (1/L)
    (mean-subtract, depthwise stride-2 conv, DCT, Linear weight, mean add-back).
    Returns (M_total.T as (P,L) f32, bias as (P,1) f32).
    """
    lpf = np.asarray(low_pass_filter, dtype=np.float64)      # (C, 1, 2)
    dct = np.asarray(dct_matrix, dtype=np.float64)           # (in_len, in_len)
    w_np = np.asarray(w, dtype=np.float64)                   # (P, in_len)
    b_np = np.asarray(b, dtype=np.float64)                   # (P,)
    in_len = dct.shape[0]
    L = int(seq_len)

    # The module uses one shared depthwise filter for all channels; fold its
    # actual values into the downsample matrix (don't hard-code 1/sqrt(2)).
    assert np.allclose(lpf, lpf[:1]), "per-channel filters need per-channel matrices"
    # TODO(synk): distinct per-channel low_pass_filter would need a (C, L, P) fused tensor.
    f0, f1 = float(lpf[0, 0, 0]), float(lpf[0, 0, 1])

    # Stride-2 conv with implicit right zero-pad when seq_len is odd.
    dmat = np.zeros((L, in_len), dtype=np.float64)            # (L, in_len)
    for i in range(in_len):
        dmat[2 * i, i] = f0
        if 2 * i + 1 < L:
            dmat[2 * i + 1, i] = f1

    center = np.eye(L) - np.full((L, L), 1.0 / L)              # mean-subtract
    m = (dmat @ dct.T) / in_len                                # (L, in_len)
    m = m @ w_np.T                                             # (L, P)
    m_total = center @ m + 1.0 / L                             # (L, P) mean add-back

    mT = jnp.asarray(m_total.T, dtype=jnp.float32)             # (P, L)
    b2 = jnp.asarray(b_np.reshape(pred_len, 1), dtype=jnp.float32)
    return mT, b2


def _ltf_kernel(x_ref, mT_ref, b_ref, o_ref):
    # x_ref : (B, L, C)   native (batch, seq, channel), whole array in VMEM
    # mT_ref: (P, L)      fused affine matrix (transposed)
    # b_ref : (P, 1)      Linear bias
    # o_ref : (B, P, C)   native (batch, pred, channel)
    bsz = x_ref.shape[0]
    mT = mT_ref[...]
    bias = b_ref[...]                                          # (P, 1)
    for bi in range(bsz):                                      # static unroll, B is small
        pred = jnp.dot(mT, x_ref[bi], preferred_element_type=jnp.float32)  # (P, C)
        o_ref[bi] = (pred + bias).astype(o_ref.dtype)


def ltf_forward(x, mT, b2):
    """x: (B, seq_len, C) f32, mT: (P, L) f32, b2: (P, 1) f32 -> (B, P, C) f32."""
    B, L, C = x.shape
    P = mT.shape[0]
    assert mT.shape[1] == L
    # Single invocation, no grid: whole arrays (a few KiB) live in VMEM, one DMA
    # in / one DMA out, no per-step pipeline overhead.
    return pl.pallas_call(
        _ltf_kernel,
        out_shape=jax.ShapeDtypeStruct((B, P, C), x.dtype),
    )(x, mT, b2)


def _reference_jax(x, dct_matrix, w, b, seq_len, pred_len):
    """Pure-JAX replica of the (unfused) PyTorch forward, for correctness checks."""
    in_len = seq_len // 2 + 1 if seq_len % 2 != 0 else seq_len // 2
    xp = jnp.transpose(x, (0, 2, 1))
    seq_mean = jnp.mean(xp, axis=-1, keepdims=True)
    xm = xp - seq_mean
    if seq_len % 2 != 0:
        xm = jnp.pad(xm, ((0, 0), (0, 0), (0, 1)))
    s1 = (xm[..., 0::2] + xm[..., 1::2]) / math.sqrt(2.0)
    s1 = jnp.einsum("bci,ki->bck", s1, dct_matrix, precision=_HI) / in_len
    pred = jnp.einsum("bci,pi->bcp", s1, w, precision=_HI) + b
    out = pred + seq_mean
    return jnp.transpose(out, (0, 2, 1))


if __name__ == "__main__":
    # configs: seq_len=16, pred_len=8, enc_in(channels)=4, batch=2
    seq_len, pred_len, channels, batch = 16, 8, 4, 2
    in_len = seq_len // 2 + 1 if seq_len % 2 != 0 else seq_len // 2

    key = jax.random.PRNGKey(0)
    kx, kw, kb = jax.random.split(key, 3)

    x = jax.random.normal(kx, (batch, seq_len, channels), dtype=jnp.float32)

    # deterministic parameter init (matches module shapes)
    low_pass_filter = jnp.full((channels, 1, 2), 1.0 / math.sqrt(2.0), dtype=jnp.float32)
    dct_matrix = jnp.asarray(_dct2_ortho_matrix(in_len))       # (in_len, in_len)
    bound = 1.0 / math.sqrt(in_len)
    w = jax.random.uniform(kw, (pred_len, in_len), jnp.float32, -bound, bound)
    b = jax.random.uniform(kb, (pred_len,), jnp.float32, -bound, bound)

    # One-time host-side folding (hoisted out of the forward per perf review).
    mT, b2 = precompute_fused_affine(low_pass_filter, dct_matrix, w, b, seq_len, pred_len)

    out = ltf_forward(x, mT, b2)
    out = jax.block_until_ready(out)

    ref = _reference_jax(x, dct_matrix, w, b, seq_len, pred_len)
    assert out.shape == (batch, pred_len, channels)
    assert jnp.allclose(out, ref, atol=1e-5, rtol=1e-5)

    print("KERNEL_OK")
</pallas_src>

<mosaic_0001>
module attributes {stable_mosaic.version = 11 : i64} {
  func.func @_ltf_kernel(%arg0: memref<2x16x4xf32, #tpu.memory_space<vmem>>, %arg1: memref<8x16xf32, #tpu.memory_space<vmem>>, %arg2: memref<8x1xf32, #tpu.memory_space<vmem>>, %arg3: memref<2x8x4xf32, #tpu.memory_space<vmem>>) attributes {dimension_semantics = [], scalar_prefetch = 0 : i64, scratch_operands = 0 : i64, tpu.core_type = #tpu.core_type<tc>} {
    %c0 = arith.constant 0 : index
    %c0_0 = arith.constant 0 : index
    %0 = vector.load %arg1[%c0, %c0_0] : memref<8x16xf32, #tpu.memory_space<vmem>>, vector<8x16xf32>
    %c0_1 = arith.constant 0 : index
    %c0_2 = arith.constant 0 : index
    %1 = vector.load %arg2[%c0_1, %c0_2] : memref<8x1xf32, #tpu.memory_space<vmem>>, vector<8x1xf32>
    %c0_3 = arith.constant 0 : index
    %c0_4 = arith.constant 0 : index
    %c0_5 = arith.constant 0 : index
    %2 = vector.load %arg0[%c0_3, %c0_4, %c0_5] : memref<2x16x4xf32, #tpu.memory_space<vmem>>, vector<1x16x4xf32>
    %3 = vector.shape_cast %2 : vector<1x16x4xf32> to vector<16x4xf32>
    %cst = arith.constant dense<0.000000e+00> : vector<8x4xf32>
    %4 = tpu.matmul %0, %3, %cst {dimension_numbers = #tpu.dot_dimension_numbers<[1], [0], [0], [1], [0, 0, 1, 1], [], []>} : vector<8x16xf32>, vector<16x4xf32>, vector<8x4xf32> -> vector<8x4xf32>
    %5 = vector.broadcast %1 : vector<8x1xf32> to vector<8x4xf32>
    %6 = arith.addf %4, %5 : vector<8x4xf32>
    %c0_6 = arith.constant 0 : index
    %c0_7 = arith.constant 0 : index
    %c0_8 = arith.constant 0 : index
    %7 = vector.load %arg3[%c0_6, %c0_7, %c0_8] : memref<2x8x4xf32, #tpu.memory_space<vmem>>, vector<1x8x4xf32>
    %8 = vector.shape_cast %7 : vector<1x8x4xf32> to vector<8x4xf32>
    %9 = vector.shape_cast %6 : vector<8x4xf32> to vector<1x8x4xf32>
    tpu.vector_store %arg3[%c0_6, %c0_7, %c0_8], %9 {strides = array<i32>} : memref<2x8x4xf32, #tpu.memory_space<vmem>>, vector<1x8x4xf32>,
    %c1 = arith.constant 1 : index
    %c0_9 = arith.constant 0 : index
    %c0_10 = arith.constant 0 : index
    %10 = vector.load %arg0[%c1, %c0_9, %c0_10] : memref<2x16x4xf32, #tpu.memory_space<vmem>>, vector<1x16x4xf32>
    %11 = vector.shape_cast %10 : vector<1x16x4xf32> to vector<16x4xf32>
    %cst_11 = arith.constant dense<0.000000e+00> : vector<8x4xf32>
    %12 = tpu.matmul %0, %11, %cst_11 {dimension_numbers = #tpu.dot_dimension_numbers<[1], [0], [0], [1], [0, 0, 1, 1], [], []>} : vector<8x16xf32>, vector<16x4xf32>, vector<8x4xf32> -> vector<8x4xf32>
    %13 = vector.broadcast %1 : vector<8x1xf32> to vector<8x4xf32>
    %14 = arith.addf %12, %13 : vector<8x4xf32>
    %c1_12 = arith.constant 1 : index
    %c0_13 = arith.constant 0 : index
    %c0_14 = arith.constant 0 : index
    %15 = vector.load %arg3[%c1_12, %c0_13, %c0_14] : memref<2x8x4xf32, #tpu.memory_space<vmem>>, vector<1x8x4xf32>
    %16 = vector.shape_cast %15 : vector<1x8x4xf32> to vector<8x4xf32>
    %17 = vector.shape_cast %14 : vector<8x4xf32> to vector<1x8x4xf32>
    tpu.vector_store %arg3[%c1_12, %c0_13, %c0_14], %17 {strides = array<i32>} : memref<2x8x4xf32, #tpu.memory_space<vmem>>, vector<1x8x4xf32>,
    return
  }
}

</mosaic_0001>

<bundles_post_ra>
// kernel: tpu_custom_call.1
= control target key start
LH: loop header
LB: loop body
LE: loop exit
PB: predicated region body
PF: predicated region fallthrough
CT: control target
= control target key end

     0   :  { %v214_v0 = vmov 0.0|0.0   ;;  %vm215_vm0 = vmmov 0   ;;  %v216_v6 = vmov 0.0   ;;  %v217_v9 = vmov 0   ;;  %s262_s0 = inlined_call_operand.vmem [shape: f32[2,16,4], index: 0, kind: input, shape index: {}]   ;;  %s263_s2 = inlined_call_operand.vmem [shape: f32[8,1], index: 2, kind: input, shape index: {}]   ;;  %s264_s1 = inlined_call_operand.vmem [shape: f32[8,16], index: 1, kind: input, shape index: {}]   ;;  %s265_s3 = inlined_call_operand.vmem [shape: f32[2,8,4], index: 3, kind: output, shape index: {}]  }
   0x1   :  { %203 = vmatprep.subr.bf16.mxu0 %v214_v0  ;;  %206 = vmatprep.subr.bf16.mxu1 %v214_v0  ;;  %v16_v1 = vld [vmem:[%s262_s0] sm:$0xff]  ;;  %v17_v2 = vld [vmem:[%s262_s0 + $0x8] sm:$0xff]  ;;  %v179_v3 = vld [vmem:[%s262_s0 + $0x10] sm:$0xff]  ;;  %vm23_vm1 = vcmask 130048   ;;  %vm97_vm2 = vcmask 31744  }
   0x2   :  { %v204_v4 = vpack.c.bf16 %v17_v2, %v16_v1  ;;  %v180_v5 = vld [vmem:[%s262_s0 + $0x18] sm:$0xff]  ;;  %193 = vmatprep.mubr.msk.f32.mxu0 %vm215_vm0, %v216_v6  ;;  %200 = vmatprep.mubr.msk.f32.mxu1 %vm215_vm0, %v216_v6  ;;  %v15_v7 = vld [vmem:[%s263_s2] sm:$0xff] }
   0x3   :  { %v207_v8 = vpack.c.bf16 %v180_v5, %v179_v3  ;;  %213 = vset.pattern.permute.xlu0 %v217_v9  ;;  %v14_v10 = vld [vmem:[%s264_s1] sm:$0xff] }
   0x4   :  { %205 = vmatpush3.bf16.msra.mxu0 %v204_v4  ;;  %20 = vperm.xlu0 %213, %v15_v7  }
   0x5   :  { %208 = vmatpush3.bf16.msra.mxu1 %v207_v8 }
   0x7   :  { %194 = vmatmul.mubr.msk.f32.vlgmr.msra.gmra.mrb[0].mxu0 %vm23_vm1, %v14_v10 }
   0x8   :  { %201 = vmatmul.mubr.msk.f32.vlgmr.msra.gmra.mrb[0].mxu1 %vm23_vm1, %v14_v10 }
  0x83   :  { %v21_v11 = vpop.permute.xlu0 %20 }
  0xda   :  { %v93_v12 = vpop.f32.mrb[0].mxu0 }
  0xdb   :  { %v94_v13 = vadd.f32 %v93_v12, %v21_v11  ;;  %v168_v14 = vpop.f32.mrb[0].mxu1  ;;  %v195_v15 = vpop.f32.mrb[1].mxu0 }
  0xdc   :  { %v169_v16 = vadd.f32 %v168_v14, %v21_v11  ;;  %v202_v17 = vpop.f32.mrb[1].mxu1 }
  0xdd   :  { %98 = vst.msk [vmem:[%s265_s3] sm:$0xff] %vm97_vm2, %v94_v13 }
  0xde   :  { %182 = vst.msk [vmem:[%s265_s3 + $0x8] sm:$0xff] %vm97_vm2, %v169_v16 }

</bundles_post_ra>
